<compile_context>
chip_gen: v7x
topology: tpu7x:2x2x1
jax: 0.10.0
libtpu: 0.0.40
codegen_flags: <defaults>
</compile_context>

<pallas_src>
import math
import functools

import jax
import jax.numpy as jnp
from jax.experimental import pallas as pl
from jax.experimental.pallas import tpu as pltpu


def _bert_attention_kernel(head_size,
                           x_ref, mask_ref,
                           wqkv_ref, bqkv_ref, wo_ref, vecs_ref,
                           o_ref):
    Bt, S, H = x_ref.shape

    x = x_ref[...].astype(jnp.float32)           # (Bt, S, H)
    x2d = x.reshape(Bt * S, H)                   # flatten rows -> fill MXU M dim
    x2d_bf = x2d.astype(jnp.bfloat16)

    # --- fused QKV projection: one (Bt*S, H) x (H, 3H) bf16 matmul, f32 accumulate ---
    qkv = jnp.dot(x2d_bf, wqkv_ref[...],
                  preferred_element_type=jnp.float32) + bqkv_ref[...]   # (Bt*S, 3H)
    qkv = qkv.reshape(Bt, S, 3 * H)
    q = qkv[:, :, 0 * H:1 * H]
    k = qkv[:, :, 1 * H:2 * H]
    v = qkv[:, :, 2 * H:3 * H]

    # --- attention scores: batched contraction (no explicit K transpose) ---
    scale = 1.0 / math.sqrt(head_size)
    scores = jnp.einsum('bqd,bkd->bqk',
                        q.astype(jnp.bfloat16), k.astype(jnp.bfloat16),
                        preferred_element_type=jnp.float32) * scale     # (Bt, S, S)
    scores = scores + mask_ref[...].astype(jnp.float32)                 # (Bt,1,S) bcast

    # --- numerically stable softmax in f32, approx reciprocal on the EUP ---
    m = jnp.max(scores, axis=-1, keepdims=True)
    e = jnp.exp(scores - m)
    probs = e * pl.reciprocal(jnp.sum(e, axis=-1, keepdims=True), approx=True)
    # TODO(synk): attention_probs_dropout_prob dropout omitted (inference / eval mode).

    # --- context: probs @ V ---
    ctx = jnp.einsum('bqk,bkd->bqd',
                     probs.astype(jnp.bfloat16), v.astype(jnp.bfloat16),
                     preferred_element_type=jnp.float32)                # (Bt, S, H)
    ctx2d = ctx.reshape(Bt * S, H)

    # --- output projection + residual + LayerNorm (BertSelfOutput) ---
    bo = vecs_ref[0:1, :]
    gamma = vecs_ref[1:2, :]
    beta = vecs_ref[2:3, :]
    proj = jnp.dot(ctx2d.astype(jnp.bfloat16), wo_ref[...],
                   preferred_element_type=jnp.float32) + bo             # (Bt*S, H)
    # TODO(synk): hidden_dropout_prob dropout in BertSelfOutput omitted (eval mode).

    h = proj + x2d                                                      # residual (f32)
    mean = jnp.mean(h, axis=-1, keepdims=True)
    var = jnp.mean((h - mean) ** 2, axis=-1, keepdims=True)
    y = (h - mean) * jax.lax.rsqrt(var + 1e-12)
    y = y * gamma + beta
    o_ref[...] = y.reshape(Bt, S, H).astype(o_ref.dtype)


def bert_attention(x, attention_mask, params, *, head_size, batch_tile=None):
    """x: (B, S, H) f32; attention_mask: (B, 1, S) additive f32 mask."""
    B, S, H = x.shape
    assert S % 8 == 0, "seq len must be a multiple of 8 (sublane tiling)"
    wq, bq, wk, bk, wv, bv, wo, bo, gamma, beta = params

    # Wrapper-side (one-time) fusion / packing of the constant parameters.
    wqkv = jnp.concatenate([wq, wk, wv], axis=1).astype(jnp.bfloat16)   # (H, 3H) bf16
    bqkv = jnp.concatenate([bq, bk, bv], axis=1).astype(jnp.float32)    # (1, 3H) f32
    wo_bf = wo.astype(jnp.bfloat16)                                     # (H, H)  bf16
    vecs = jnp.concatenate([bo, gamma, beta], axis=0).astype(jnp.float32)  # (3, H) f32

    if batch_tile is None:
        batch_tile = B                     # small B: whole batch in one grid step
    Bt = batch_tile
    assert B % Bt == 0

    kernel = functools.partial(_bert_attention_kernel, head_size)

    return pl.pallas_call(
        kernel,
        out_shape=jax.ShapeDtypeStruct((B, S, H), x.dtype),
        grid_spec=pltpu.PrefetchScalarGridSpec(
            num_scalar_prefetch=0,
            grid=(B // Bt,),
            in_specs=[
                pl.BlockSpec((Bt, S, H), lambda i: (i, 0, 0)),    # x
                pl.BlockSpec((Bt, 1, S), lambda i: (i, 0, 0)),    # additive mask (B,1,S)
                pl.BlockSpec((H, 3 * H), lambda i: (0, 0)),       # fused Wqkv (bf16)
                pl.BlockSpec((1, 3 * H), lambda i: (0, 0)),       # fused bqkv
                pl.BlockSpec((H, H), lambda i: (0, 0)),           # Wo (bf16)
                pl.BlockSpec((3, H), lambda i: (0, 0)),           # [bo; gamma; beta]
            ],
            out_specs=pl.BlockSpec((Bt, S, H), lambda i: (i, 0, 0)),
        ),
        compiler_params=pltpu.CompilerParams(
            dimension_semantics=("parallel",),
            vmem_limit_bytes=32 * 1024 * 1024),
    )(x, attention_mask, wqkv, bqkv, wo_bf, vecs)


def make_params(key, hidden):
    """Deterministic synthetic parameters (shapes match the module's __init__)."""
    keys = jax.random.split(key, 8)
    scale = 0.02
    wq = scale * jax.random.normal(keys[0], (hidden, hidden), jnp.float32)
    bq = scale * jax.random.normal(keys[1], (1, hidden), jnp.float32)
    wk = scale * jax.random.normal(keys[2], (hidden, hidden), jnp.float32)
    bk = scale * jax.random.normal(keys[3], (1, hidden), jnp.float32)
    wv = scale * jax.random.normal(keys[4], (hidden, hidden), jnp.float32)
    bv = scale * jax.random.normal(keys[5], (1, hidden), jnp.float32)
    wo = scale * jax.random.normal(keys[6], (hidden, hidden), jnp.float32)
    bo = scale * jax.random.normal(keys[7], (1, hidden), jnp.float32)
    gamma = jnp.ones((1, hidden), jnp.float32)
    beta = jnp.zeros((1, hidden), jnp.float32)
    return (wq, bq, wk, bk, wv, bv, wo, bo, gamma, beta)


def reference(x, mask, params, head_size):
    """Pure-JAX f32 reference (module semantics) for the correctness check."""
    wq, bq, wk, bk, wv, bv, wo, bo, gamma, beta = params
    q = x @ wq + bq
    k = x @ wk + bk
    v = x @ wv + bv
    scores = jnp.einsum('bsh,bth->bst', q, k) / math.sqrt(head_size) + mask
    probs = jax.nn.softmax(scores, axis=-1)
    ctx = jnp.einsum('bst,bth->bsh', probs, v)
    h = ctx @ wo + bo + x
    mean = h.mean(-1, keepdims=True)
    var = ((h - mean) ** 2).mean(-1, keepdims=True)
    return (h - mean) * jax.lax.rsqrt(var + 1e-12) * gamma + beta


if __name__ == "__main__":
    # Small shapes consistent with the module: hidden=32, 4 heads -> head_size=8.
    B, S, H, NUM_HEADS = 2, 8, 32, 4
    HEAD_SIZE = H // NUM_HEADS

    key = jax.random.PRNGKey(0)
    k_x, k_m, k_p = jax.random.split(key, 3)

    x = jax.random.normal(k_x, (B, S, H), jnp.float32)
    # Additive attention mask, HF-BERT style, kept in compact (B, 1, S) form.
    mask_bits = jax.random.bernoulli(k_m, 0.9, (B, 1, S)).astype(jnp.float32)
    attention_mask = (1.0 - mask_bits) * -1e9

    params = make_params(k_p, H)

    out = bert_attention(x, attention_mask, params, head_size=HEAD_SIZE)
    out = jax.block_until_ready(out)

    ref = reference(x, attention_mask, params, HEAD_SIZE)
    assert out.shape == (B, S, H)
    # Tolerance loosened vs. pure-f32: bf16 MXU operands + approx reciprocal.
    assert jnp.allclose(out, ref, atol=2e-2, rtol=2e-2), "mismatch vs reference"

    print("KERNEL_OK")
</pallas_src>

<mosaic_0001>
module attributes {stable_mosaic.version = 11 : i64} {
  func.func @_bert_attention_kernel(%arg0: i32, %arg1: memref<2x8x32xf32, #tpu.memory_space<vmem>>, %arg2: memref<2x1x8xf32, #tpu.memory_space<vmem>>, %arg3: memref<32x96xbf16, #tpu.memory_space<vmem>>, %arg4: memref<1x96xf32, #tpu.memory_space<vmem>>, %arg5: memref<32x32xbf16, #tpu.memory_space<vmem>>, %arg6: memref<3x32xf32, #tpu.memory_space<vmem>>, %arg7: memref<2x8x32xf32, #tpu.memory_space<vmem>>) attributes {dimension_semantics = [#tpu.dimension_semantics<parallel>], iteration_bounds = array<i64: 1>, scalar_prefetch = 0 : i64, scratch_operands = 0 : i64, tpu.core_type = #tpu.core_type<tc>, window_params = [{transform_indices = @transform_0, window_bounds = array<i64: 2, 8, 32>}, {transform_indices = @transform_1, window_bounds = array<i64: 2, 1, 8>}, {pipeline_mode = #tpu.pipeline_mode<synchronous>, transform_indices = @transform_2, window_bounds = array<i64: 32, 96>}, {pipeline_mode = #tpu.pipeline_mode<synchronous>, transform_indices = @transform_3, window_bounds = array<i64: 1, 96>}, {pipeline_mode = #tpu.pipeline_mode<synchronous>, transform_indices = @transform_4, window_bounds = array<i64: 32, 32>}, {pipeline_mode = #tpu.pipeline_mode<synchronous>, transform_indices = @transform_5, window_bounds = array<i64: 3, 32>}, {transform_indices = @transform_6, window_bounds = array<i64: 2, 8, 32>}]} {
    %c0 = arith.constant 0 : index
    %c0_0 = arith.constant 0 : index
    %c0_1 = arith.constant 0 : index
    %0 = vector.load %arg1[%c0, %c0_0, %c0_1] : memref<2x8x32xf32, #tpu.memory_space<vmem>>, vector<2x8x32xf32>
    %1 = vector.shape_cast %0 : vector<2x8x32xf32> to vector<16x32xf32>
    %2 = arith.truncf %1 : vector<16x32xf32> to vector<16x32xbf16>
    %c0_2 = arith.constant 0 : index
    %c0_3 = arith.constant 0 : index
    %3 = vector.load %arg3[%c0_2, %c0_3] : memref<32x96xbf16, #tpu.memory_space<vmem>>, vector<32x96xbf16>
    %cst = arith.constant dense<0.000000e+00> : vector<16x96xf32>
    %4 = tpu.matmul %2, %3, %cst {dimension_numbers = #tpu.dot_dimension_numbers<[1], [0], [0], [1], [0, 0, 1, 1], [], []>} : vector<16x32xbf16>, vector<32x96xbf16>, vector<16x96xf32> -> vector<16x96xf32>
    %c0_4 = arith.constant 0 : index
    %c0_5 = arith.constant 0 : index
    %5 = vector.load %arg4[%c0_4, %c0_5] : memref<1x96xf32, #tpu.memory_space<vmem>>, vector<1x96xf32>
    %6 = vector.broadcast %5 : vector<1x96xf32> to vector<16x96xf32>
    %7 = arith.addf %4, %6 : vector<16x96xf32>
    %8 = vector.shape_cast %7 : vector<16x96xf32> to vector<2x8x96xf32>
    %9 = vector.extract_strided_slice %8 {offsets = [0, 0, 0], sizes = [2, 8, 32], strides = [1, 1, 1]} : vector<2x8x96xf32> to vector<2x8x32xf32>
    %10 = vector.extract_strided_slice %8 {offsets = [0, 0, 32], sizes = [2, 8, 32], strides = [1, 1, 1]} : vector<2x8x96xf32> to vector<2x8x32xf32>
    %11 = vector.extract_strided_slice %8 {offsets = [0, 0, 64], sizes = [2, 8, 32], strides = [1, 1, 1]} : vector<2x8x96xf32> to vector<2x8x32xf32>
    %12 = arith.truncf %9 : vector<2x8x32xf32> to vector<2x8x32xbf16>
    %13 = arith.truncf %10 : vector<2x8x32xf32> to vector<2x8x32xbf16>
    "tpu.trace_start"() <{level = 10 : i32, message = "bqd,bkd->bqk"}> : () -> ()
    %cst_6 = arith.constant dense<0.000000e+00> : vector<2x8x8xf32>
    %14 = tpu.matmul %12, %13, %cst_6 {dimension_numbers = #tpu.dot_dimension_numbers<[2], [2], [1], [1], [0, 0, 0, 1, 1, 1], [0], [0]>} : vector<2x8x32xbf16>, vector<2x8x32xbf16>, vector<2x8x8xf32> -> vector<2x8x8xf32>
    "tpu.trace_stop"() : () -> ()
    %cst_7 = arith.constant 0.353553385 : f32
    %15 = vector.broadcast %cst_7 : f32 to vector<2x8x8xf32>
    %16 = arith.mulf %14, %15 : vector<2x8x8xf32>
    %c0_8 = arith.constant 0 : index
    %c0_9 = arith.constant 0 : index
    %c0_10 = arith.constant 0 : index
    %17 = vector.load %arg2[%c0_8, %c0_9, %c0_10] : memref<2x1x8xf32, #tpu.memory_space<vmem>>, vector<2x1x8xf32>
    %18 = vector.broadcast %17 : vector<2x1x8xf32> to vector<2x8x8xf32>
    %19 = arith.addf %16, %18 : vector<2x8x8xf32>
    %cst_11 = arith.constant dense<0xFF800000> : vector<2x8xf32>
    %20 = vector.multi_reduction <maximumf>, %19, %cst_11 [2] : vector<2x8x8xf32> to vector<2x8xf32>
    %21 = vector.shape_cast %20 : vector<2x8xf32> to vector<2x8x1xf32>
    %22 = vector.broadcast %21 : vector<2x8x1xf32> to vector<2x8x8xf32>
    %23 = arith.subf %19, %22 : vector<2x8x8xf32>
    %24 = math.exp %23 : vector<2x8x8xf32>
    %cst_12 = arith.constant dense<0.000000e+00> : vector<2x8xf32>
    %25 = vector.multi_reduction <add>, %24, %cst_12 [2] : vector<2x8x8xf32> to vector<2x8xf32>
    %26 = vector.shape_cast %25 : vector<2x8xf32> to vector<2x8x1xf32>
    %27 = tpu.reciprocal %26 {approx = true} : vector<2x8x1xf32> -> vector<2x8x1xf32>
    %28 = vector.broadcast %27 : vector<2x8x1xf32> to vector<2x8x8xf32>
    %29 = arith.mulf %24, %28 : vector<2x8x8xf32>
    %30 = arith.truncf %29 : vector<2x8x8xf32> to vector<2x8x8xbf16>
    %31 = arith.truncf %11 : vector<2x8x32xf32> to vector<2x8x32xbf16>
    "tpu.trace_start"() <{level = 10 : i32, message = "bqk,bkd->bqd"}> : () -> ()
    %cst_13 = arith.constant dense<0.000000e+00> : vector<2x8x32xf32>
    %32 = tpu.matmul %30, %31, %cst_13 {dimension_numbers = #tpu.dot_dimension_numbers<[2], [1], [1], [2], [0, 0, 0, 1, 1, 2], [0], [0]>} : vector<2x8x8xbf16>, vector<2x8x32xbf16>, vector<2x8x32xf32> -> vector<2x8x32xf32>
    "tpu.trace_stop"() : () -> ()
    %33 = vector.shape_cast %32 : vector<2x8x32xf32> to vector<16x32xf32>
    %c0_14 = arith.constant 0 : index
    %c0_15 = arith.constant 0 : index
    %34 = vector.load %arg6[%c0_14, %c0_15] : memref<3x32xf32, #tpu.memory_space<vmem>>, vector<1x32xf32>
    %c1 = arith.constant 1 : index
    %c0_16 = arith.constant 0 : index
    %35 = vector.load %arg6[%c1, %c0_16] : memref<3x32xf32, #tpu.memory_space<vmem>>, vector<1x32xf32>
    %c2 = arith.constant 2 : index
    %c0_17 = arith.constant 0 : index
    %36 = vector.load %arg6[%c2, %c0_17] : memref<3x32xf32, #tpu.memory_space<vmem>>, vector<1x32xf32>
    %37 = arith.truncf %33 : vector<16x32xf32> to vector<16x32xbf16>
    %c0_18 = arith.constant 0 : index
    %c0_19 = arith.constant 0 : index
    %38 = vector.load %arg5[%c0_18, %c0_19] : memref<32x32xbf16, #tpu.memory_space<vmem>>, vector<32x32xbf16>
    %cst_20 = arith.constant dense<0.000000e+00> : vector<16x32xf32>
    %39 = tpu.matmul %37, %38, %cst_20 {dimension_numbers = #tpu.dot_dimension_numbers<[1], [0], [0], [1], [0, 0, 1, 1], [], []>} : vector<16x32xbf16>, vector<32x32xbf16>, vector<16x32xf32> -> vector<16x32xf32>
    %40 = vector.broadcast %34 : vector<1x32xf32> to vector<16x32xf32>
    %41 = arith.addf %39, %40 : vector<16x32xf32>
    %42 = arith.addf %41, %1 : vector<16x32xf32>
    %cst_21 = arith.constant dense<0.000000e+00> : vector<16xf32>
    %43 = vector.multi_reduction <add>, %42, %cst_21 [1] : vector<16x32xf32> to vector<16xf32>
    %44 = vector.shape_cast %43 : vector<16xf32> to vector<16x1xf32>
    %cst_22 = arith.constant 3.200000e+01 : f32
    %45 = vector.broadcast %cst_22 : f32 to vector<16x1xf32>
    %46 = arith.divf %44, %45 : vector<16x1xf32>
    %47 = vector.broadcast %46 : vector<16x1xf32> to vector<16x32xf32>
    %48 = arith.subf %42, %47 : vector<16x32xf32>
    %49 = arith.mulf %48, %48 : vector<16x32xf32>
    %cst_23 = arith.constant dense<0.000000e+00> : vector<16xf32>
    %50 = vector.multi_reduction <add>, %49, %cst_23 [1] : vector<16x32xf32> to vector<16xf32>
    %51 = vector.shape_cast %50 : vector<16xf32> to vector<16x1xf32>
    %cst_24 = arith.constant 3.200000e+01 : f32
    %52 = vector.broadcast %cst_24 : f32 to vector<16x1xf32>
    %53 = arith.divf %51, %52 : vector<16x1xf32>
    %54 = vector.broadcast %46 : vector<16x1xf32> to vector<16x32xf32>
    %55 = arith.subf %42, %54 : vector<16x32xf32>
    %cst_25 = arith.constant 9.99999996E-13 : f32
    %56 = vector.broadcast %cst_25 : f32 to vector<16x1xf32>
    %57 = arith.addf %53, %56 : vector<16x1xf32>
    %58 = math.rsqrt %57 : vector<16x1xf32>
    %59 = vector.broadcast %58 : vector<16x1xf32> to vector<16x32xf32>
    %60 = arith.mulf %55, %59 : vector<16x32xf32>
    %61 = vector.broadcast %35 : vector<1x32xf32> to vector<16x32xf32>
    %62 = arith.mulf %60, %61 : vector<16x32xf32>
    %63 = vector.broadcast %36 : vector<1x32xf32> to vector<16x32xf32>
    %64 = arith.addf %62, %63 : vector<16x32xf32>
    %65 = vector.shape_cast %64 : vector<16x32xf32> to vector<2x8x32xf32>
    %c0_26 = arith.constant 0 : index
    %c0_27 = arith.constant 0 : index
    %c0_28 = arith.constant 0 : index
    %66 = vector.load %arg7[%c0_26, %c0_27, %c0_28] : memref<2x8x32xf32, #tpu.memory_space<vmem>>, vector<2x8x32xf32>
    tpu.vector_store %arg7[%c0_26, %c0_27, %c0_28], %65 {strides = array<i32>} : memref<2x8x32xf32, #tpu.memory_space<vmem>>, vector<2x8x32xf32>,
    return
  }
  func.func @transform_0(%arg0: i32) -> (i32, i32, i32) {
    %c0_i32 = arith.constant 0 : i32
    %c0_i32_0 = arith.constant 0 : i32
    %c0_i32_1 = arith.constant 0 : i32
    return %arg0, %c0_i32, %c0_i32_0 : i32, i32, i32
  }
  func.func @transform_1(%arg0: i32) -> (i32, i32, i32) {
    %c0_i32 = arith.constant 0 : i32
    %c0_i32_0 = arith.constant 0 : i32
    %c0_i32_1 = arith.constant 0 : i32
    return %arg0, %c0_i32, %c0_i32_0 : i32, i32, i32
  }
  func.func @transform_2(%arg0: i32) -> (i32, i32) {
    %c0_i32 = arith.constant 0 : i32
    %c0_i32_0 = arith.constant 0 : i32
    %c0_i32_1 = arith.constant 0 : i32
    return %c0_i32, %c0_i32_0 : i32, i32
  }
  func.func @transform_3(%arg0: i32) -> (i32, i32) {
    %c0_i32 = arith.constant 0 : i32
    %c0_i32_0 = arith.constant 0 : i32
    %c0_i32_1 = arith.constant 0 : i32
    return %c0_i32, %c0_i32_0 : i32, i32
  }
  func.func @transform_4(%arg0: i32) -> (i32, i32) {
    %c0_i32 = arith.constant 0 : i32
    %c0_i32_0 = arith.constant 0 : i32
    %c0_i32_1 = arith.constant 0 : i32
    return %c0_i32, %c0_i32_0 : i32, i32
  }
  func.func @transform_5(%arg0: i32) -> (i32, i32) {
    %c0_i32 = arith.constant 0 : i32
    %c0_i32_0 = arith.constant 0 : i32
    %c0_i32_1 = arith.constant 0 : i32
    return %c0_i32, %c0_i32_0 : i32, i32
  }
  func.func @transform_6(%arg0: i32) -> (i32, i32, i32) {
    %c0_i32 = arith.constant 0 : i32
    %c0_i32_0 = arith.constant 0 : i32
    %c0_i32_1 = arith.constant 0 : i32
    return %arg0, %c0_i32, %c0_i32_0 : i32, i32, i32
  }
}

</mosaic_0001>

<bundles_post_ra>
// kernel: tpu_custom_call.1
= control target key start
LH: loop header
LB: loop body
LE: loop exit
PB: predicated region body
PF: predicated region fallthrough
CT: control target
= control target key end

     0   :  { %11 = vsyncpa [#allocation3], 0  ;;  %s871_s0 = inlined_call_operand.hbm [shape: f32[2,8,32], index: 0, kind: input, shape index: {}]   ;;  %s872_s1 = inlined_call_operand.vmem [shape: f32[2,1,8], index: 1, kind: input, shape index: {}]   ;;  %s873_s2 = inlined_call_operand.hbm [shape: bf16[32,96], index: 2, kind: input, shape index: {}]   ;;  %s874_s3 = inlined_call_operand.vmem [shape: f32[1,96], index: 3, kind: input, shape index: {}]   ;;  %s875_s4 = inlined_call_operand.hbm [shape: bf16[32,32], index: 4, kind: input, shape index: {}]   ;;  %s876_s5 = inlined_call_operand.vmem [shape: f32[3,32], index: 5, kind: input, shape index: {}]   ;;  %s877_s6 = inlined_call_operand.hbm [shape: f32[2,8,32], index: 6, kind: output, shape index: {}]  }
   0x1   :  { %12 = vsyncpa [#allocation6], 0 }
   0x2   :  { %13 = vsyncpa [#allocation4], 0  ;;  %s697_s21 = smov [#allocation5]   ;;  %s603_s25 = scalar_lea.hbm %s873_s2, 256 }
   0x3   :  { %s33_s22 = sshll.u32 %s697_s21, 4  ;;  %p604_p0 = scmp.ne.s32.totalorder %s873_s2, %s603_s25  ;;  %s34_s22 = int_to_ptr.vmem [resolvable:$true] %s33_s22 }
   0x4   :  { %p607_p1 = scmp.lt.u32.totalorder %s603_s25, %s873_s2 }
   0x6   :  { %p609_p2 = pnand %p607_p1, %p604_p0 }
   0x8   :  { %612 = shalt.err (!%p609_p2)
}
   0x9   :  { %s613_s30 = scalar_lea.vmem %s34_s22, 256  ;;  %p618_p4 = scmp.lt.s32.totalorder %s34_s22, %s34_s22 }
   0xa   :  { %p614_p3 = scmp.ne.s32.totalorder %s34_s22, %s613_s30  ;;  %p619_p5 = scmp.lt.s32.totalorder %s613_s30, %s613_s30 }
   0xc   :  { %p620_p6 = por %p619_p5, %p618_p4 }
   0xe   :  { %p621_p7 = pnand %p620_p6, %p614_p3 }
  0x10   :  { %624 = shalt.err (!%p621_p7)
}
  0x11   :  { %s698_s7 = smov 64   ;;  %s699_s8 = smov 4  }
  0x12   :  { %39 = dma.hbm_to_vmem [thread:$0]  %s873_s2, 256, %s34_s22, [#allocation6], %s698_s7, %s698_s7, %s699_s8  }
  0x13   :  { %s700_s11 = smov [#allocation2]   ;;  %s625_s15 = scalar_lea.hbm %s871_s0, 256 }
  0x14   :  { %s19_s12 = sshll.u32 %s700_s11, 4  ;;  %p626_p8 = scmp.ne.s32.totalorder %s871_s0, %s625_s15  ;;  %s20_s12 = int_to_ptr.vmem [resolvable:$true] %s19_s12 }
  0x15   :  { %p629_p9 = scmp.lt.u32.totalorder %s625_s15, %s871_s0 }
  0x17   :  { %p631_p10 = pnand %p629_p9, %p626_p8 }
  0x19   :  { %634 = shalt.err (!%p631_p10)
}
  0x1a   :  { %s635_s20 = scalar_lea.vmem %s20_s12, 256  ;;  %p640_p12 = scmp.lt.s32.totalorder %s20_s12, %s20_s12 }
  0x1b   :  { %p636_p11 = scmp.ne.s32.totalorder %s20_s12, %s635_s20  ;;  %p641_p13 = scmp.lt.s32.totalorder %s635_s20, %s635_s20 }
  0x1d   :  { %p642_p0 = por %p641_p13, %p640_p12 }
  0x1f   :  { %p643_p1 = pnand %p642_p0, %p636_p11 }
  0x21   :  { %646 = shalt.err (!%p643_p1)
}
  0x22   :  { %s701_s2 = smov 128   ;;  %s702_s21 = smov 8  }
  0x23   :  { %25 = dma.hbm_to_vmem [thread:$0]  %s871_s0, 256, %s20_s12, [#allocation3], %s701_s2, %s701_s2, %s702_s21  }
  0x24   :  { %s703_s24 = smov [#allocation7]   ;;  %s647_s28 = scalar_lea.hbm %s875_s4, 256 }
  0x25   :  { %s47_s25 = sshll.u32 %s703_s24, 4  ;;  %p648_p2 = scmp.ne.s32.totalorder %s875_s4, %s647_s28  ;;  %s48_s25 = int_to_ptr.vmem [resolvable:$true] %s47_s25 }
  0x26   :  { %p651_p3 = scmp.lt.u32.totalorder %s647_s28, %s875_s4 }
  0x28   :  { %p653_p4 = pnand %p651_p3, %p648_p2 }
  0x2a   :  { %656 = shalt.err (!%p653_p4)
}
  0x2b   :  { %s657_s11 = scalar_lea.vmem %s48_s25, 256  ;;  %p662_p6 = scmp.lt.s32.totalorder %s48_s25, %s48_s25 }
  0x2c   :  { %p658_p5 = scmp.ne.s32.totalorder %s48_s25, %s657_s11  ;;  %p663_p7 = scmp.lt.s32.totalorder %s657_s11, %s657_s11 }
  0x2e   :  { %p664_p8 = por %p663_p7, %p662_p6 }
  0x30   :  { %p665_p9 = pnand %p664_p8, %p658_p5 }
  0x32   :  { %668 = shalt.err (!%p665_p9)
}
  0x33   :  { %53 = dma.hbm_to_vmem [thread:$0]  %s875_s4, 256, %s48_s25, [#allocation6], %s698_s7, %s698_s7, %s699_s8  }
  0x34   :  { %691 = dma.done.wait [#allocation3], 256  }
  0x35   :  { %692 = vsyncadd [#allocation3], 4294967040 }
  0x36   :  { %693 = dma.done.wait [#allocation6], 512  }
  0x37   :  { %694 = vsyncadd [#allocation6], 4294966784  ;;  %v704_v0 = vmov 0.0   ;;  %vm705_vm0 = vmmov 0   ;;  %v587_v1 = vld [vmem:[#allocation5] sm:$0xff]   ;;  %v588_v2 = vld [vmem:[#allocation5 + $0x8] sm:$0xff]  }
  0x38   :  { %536 = vmatprep.subr.bf16.mxu0 %v704_v0  ;;  %540 = vmatprep.mubr.msk.bf16.mxu0 %vm705_vm0, %v704_v0  ;;  %v794_v3 = vld [vmem:[#allocation2] sm:$0xff]  ;;  %v796_v4 = vld [vmem:[#allocation2 + $0x8] sm:$0xff]  ;;  %vm92_vm1 = vcmask 261120   ;;  %s706_s13 = smov 96   ;;  %vm255_vm2 = vcmask 64512   ;;  %vm285_vm3 = vcmask 1043456  }
  0x39   :  { %544 = vmatprep.subr.bf16.mxu1 %v704_v0  ;;  %546 = vmatprep.mubr.msk.bf16.mxu1 %vm705_vm0, %v704_v0  ;;  %v68_v5 = vpack.c.bf16 %v796_v4, %v794_v3  ;;  %v506_v6 = vld [vmem:[%s874_s3] ss:$0 sm:$0xff]  ;;  %v513_v27 = vld [vmem:[%s872_s1 + $0x1] ss:$0 sm:$0xff]  ;;  %v590_v58 = vld [vmem:[#allocation7 + $0x8] sm:$0xff]   ;;  %s707_s22 = smov [#allocation8]  }
  0x3a   :  { %537 = vmatpush3.bf16.msra.mxu0 %v587_v1  ;;  %v512_v20 = vld [vmem:[%s872_s1] ss:$0 sm:$0xff]  ;;  %s493_s23 = sshll.u32 %s707_s22, 4  ;;  %s494_s23 = int_to_ptr.vmem [resolvable:$true] %s493_s23 }
  0x3b   :  { %538 = vmatprep.subr.bf16.mxu0 %v704_v0  ;;  %v589_v57 = vld [vmem:[#allocation7] sm:$0xff]   ;;  %s669_s24 = scalar_lea.vmem %s494_s23, 256  ;;  %p674_p11 = scmp.lt.s32.totalorder %s494_s23, %s494_s23 }
  0x3c   :  { %p670_p10 = scmp.ne.s32.totalorder %s494_s23, %s669_s24  ;;  %p675_p12 = scmp.lt.s32.totalorder %s669_s24, %s669_s24 }
  0x3e   :  { %539 = vmatpush3.bf16.msra.mxu0 %v588_v2  ;;  %p676_p13 = por %p675_p12, %p674_p11 }
  0x3f   :  { %550 = vmatprep.subr.bf16.mxu0 %v704_v0 }
  0x40   :  { %p677_p0 = pnand %p676_p13, %p670_p10 }
  0x41   :  { %541 = vmatmul.mubr.msk.bf16.vlgmr.msra.gmra.mrb[0].mxu0 %vm92_vm1, %v68_v5 }
  0x42   :  { %552 = vmatprep.mubr.msk.bf16.mxu0 %vm705_vm0, %v704_v0 }
 0x114   :  { %v130_v7 = vpop.f32.mrb[0].mxu0 }
 0x115   :  { %v131_v8 = vadd.f32 %v506_v6, %v130_v7  ;;  %v542_v9 = vpop.f32.mrb[1].mxu0  ;;  %v516_v7 = vld [vmem:[%s876_s5] ss:$0 sm:$0xff] }
 0x116   :  { %v133_v10 = vpop.f32.mrb[2].mxu0 }
 0x117   :  { %v137_v11 = vpack.c.bf16 %v131_v8, %v131_v8  ;;  %v134_v12 = vadd.f32 %v506_v6, %v133_v10  ;;  %v543_v13 = vpop.f32.mrb[3].mxu0 }
 0x119   :  { %140 = vrot.lane.b32.xlu0 %v137_v11, %s706_s13  ;;  %v138_v14 = vpack.c.bf16 %v134_v12, %v134_v12 }
 0x11d   :  { %189 = vrot.lane.b32.xlu0 %v138_v14, %s706_s13 }
 0x18b   :  { %v141_v15 = vpop.permute.xlu0 %140 }
 0x18c   :  { %v146_v16 = vsel %vm92_vm1, %v141_v15, 0 }
 0x18d   :  { %545 = vmatpush3.bf16.xpose.msra.mxu1 %v146_v16 }
 0x18e   :  { %556 = vmatprep.subr.bf16.mxu1 %v704_v0 }
 0x18f   :  { %v190_v17 = vpop.permute.xlu0 %189 }
 0x190   :  { %v195_v18 = vsel %vm92_vm1, %v190_v17, 0 }
 0x191   :  { %551 = vmatpush3.bf16.xpose.msra.mxu0 %v195_v18 }
 0x192   :  { %562 = vmatprep.subr.bf16.mxu0 %v704_v0 }
 0x194   :  { %547 = vmatmul.mubr.msk.bf16.vlgmr.msra.gmra.mrb[0].mxu1 %vm92_vm1, %v137_v11 }
 0x195   :  { %558 = vmatprep.mubr.msk.bf16.mxu1 %vm705_vm0, %v704_v0 }
 0x198   :  { %553 = vmatmul.mubr.msk.bf16.vlgmr.msra.gmra.mrb[4].mxu0 %vm92_vm1, %v138_v14 }
 0x199   :  { %564 = vmatprep.mubr.msk.bf16.mxu0 %vm705_vm0, %v704_v0 }
 0x267   :  { %v182_v19 = vpop.f32.mrb[0].mxu1 }
 0x268   :  { %v237_v21 = vmul.f32 0.35355338, %v182_v19  ;;  %v548_v22 = vpop.f32.mrb[1].mxu1 }
 0x269   :  { %v185_v23 = vpop.f32.mrb[2].mxu1 }
 0x26a   :  { %v549_v24 = vpop.f32.mrb[3].mxu1  ;;  %v253_v25 = vadd.f32 %v512_v20, %v237_v21 }
 0x26b   :  { %v231_v26 = vpop.f32.mrb[4].mxu0 }
 0x26c   :  { %v238_v28 = vmul.f32 0.35355338, %v231_v26  ;;  %v554_v29 = vpop.f32.mrb[5].mxu0  ;;  %v256_v30 = vsel %vm255_vm2, %v253_v25, -inf }
 0x26d   :  { %257 = vmax.xlane.f32.xlu1 %v256_v30  ;;  %v234_v31 = vpop.f32.mrb[6].mxu0 }
 0x26e   :  { %v555_v32 = vpop.f32.mrb[7].mxu0  ;;  %v254_v33 = vadd.f32 %v513_v27, %v238_v28 }
 0x26f   :  { %v520_v32 = vld [vmem:[%s876_s5 + $0x1] ss:$0 sm:$0xff] }
 0x270   :  { %v259_v34 = vsel %vm255_vm2, %v254_v33, -inf }
 0x271   :  { %260 = vmax.xlane.f32.xlu1 %v259_v34  ;;  %v521_v34 = vld [vmem:[%s876_s5 + $0x2] ss:$0 sm:$0xff] }
 0x282   :  { %280 = vrot.lane.b32.xlu1 %v137_v11, %s698_s7 }
 0x2fa   :  { %v258_v35 = vpop.xlane.xlu1 %257 }
 0x2fb   :  { %v262_v36 = vsub.f32 %v253_v25, %v258_v35 }
 0x2fd   :  { %v264_v37 = vmul.f32 1.442695, %v262_v36 }
 0x2fe   :  { %v261_v38 = vpop.xlane.xlu1 %260 }
 0x2ff   :  { %591 = vpow2.f32 %v264_v37  ;;  %v263_v39 = vsub.f32 %v254_v33, %v261_v38 }
 0x301   :  { %v266_v40 = vmul.f32 1.442695, %v263_v39 }
 0x302   :  { %v281_v41 = vpop.permute.xlu1 %280 }
 0x303   :  { %593 = vpow2.f32 %v266_v40  ;;  %v287_v42 = vsel %vm285_vm3, %v281_v41, 0 }
 0x304   :  { %557 = vmatpush3.bf16.msra.mxu1 %v287_v42 }
 0x305   :  { %568 = vmatprep.subr.bf16.mxu1 %v704_v0 }
 0x309   :  { %v592_v43 = vpop.eup %591 }
 0x30a   :  { %v268_v44 = vsel %vm255_vm2, %v592_v43, 0.0 }
 0x30b   :  { %269 = vadd.xlane.f32.xlu0 %v268_v44 }
 0x30d   :  { %v594_v45 = vpop.eup %593 }
 0x30e   :  { %v271_v46 = vsel %vm255_vm2, %v594_v45, 0.0 }
 0x30f   :  { %272 = vadd.xlane.f32.xlu1 %v271_v46 }
 0x320   :  { %329 = vrot.lane.b32.xlu1 %v138_v14, %s698_s7 }
 0x398   :  { %v270_v47 = vpop.xlane.xlu0 %269 }
 0x399   :  { %595 = vrcp.f32 %v270_v47 }
 0x39c   :  { %v273_v48 = vpop.xlane.xlu1 %272 }
 0x39d   :  { %597 = vrcp.f32 %v273_v48 }
 0x3a0   :  { %v330_v49 = vpop.permute.xlu1 %329 }
 0x3a1   :  { %v335_v50 = vsel %vm285_vm3, %v330_v49, 0 }
 0x3a2   :  { %563 = vmatpush3.bf16.msra.mxu0 %v335_v50 }
 0x3a3   :  { %v596_v51 = vpop.eup %595 }
 0x3a4   :  { %v276_v52 = vmul.f32 %v596_v51, %v592_v43 }
 0x3a6   :  { %v278_v53 = vpack.c.bf16 %v276_v52, %v276_v52 }
 0x3a7   :  { %v598_v54 = vpop.eup %597 }
 0x3a8   :  { %v277_v55 = vmul.f32 %v598_v54, %v594_v45  ;;  %559 = vmatmul.mubr.msk.bf16.vlgmr.msra.gmra.mrb[4].mxu1 %vm255_vm2, %v278_v53 }
 0x3a9   :  { %572 = vmatprep.mubr.msk.bf16.mxu1 %vm705_vm0, %v704_v0  ;;  %569 = vmatpush3.bf16.msra.mxu1 %v589_v57 }
 0x3aa   :  { %v279_v56 = vpack.c.bf16 %v277_v55, %v277_v55  ;;  %570 = vmatprep.subr.bf16.mxu1 %v704_v0 }
 0x3ac   :  { %565 = vmatmul.mubr.msk.bf16.vlgmr.msra.gmra.mrb[8].mxu0 %vm255_vm2, %v279_v56 }
 0x3ad   :  { %571 = vmatpush3.bf16.msra.mxu1 %v590_v58 }
 0x47b   :  { %v323_v59 = vpop.f32.mrb[4].mxu1 }
 0x47c   :  { %v560_v60 = vpop.f32.mrb[5].mxu1 }
 0x47d   :  { %v326_v61 = vpop.f32.mrb[6].mxu1 }
 0x47e   :  { %v561_v62 = vpop.f32.mrb[7].mxu1 }
 0x47f   :  { %v371_v63 = vpop.f32.mrb[8].mxu0 }
 0x480   :  { %v380_v1 = vpack.c.bf16 %v371_v63, %v323_v59  ;;  %v566_v2 = vpop.f32.mrb[9].mxu0 }
 0x481   :  { %v374_v5 = vpop.f32.mrb[10].mxu0 }
 0x482   :  { %v567_v6 = vpop.f32.mrb[11].mxu0  ;;  %573 = vmatmul.mubr.msk.bf16.vlgmr.msra.gmra.mrb[8].mxu1 %vm92_vm1, %v380_v1 }
 0x555   :  { %v438_v8 = vpop.f32.mrb[8].mxu1 }
 0x556   :  { %v439_v9 = vadd.f32 %v516_v7, %v438_v8  ;;  %v574_v0 = vpop.f32.mrb[9].mxu1 }
 0x557   :  { %v441_v10 = vpop.f32.mrb[10].mxu1 }
 0x558   :  { %v442_v11 = vadd.f32 %v516_v7, %v441_v10  ;;  %v575_v12 = vpop.f32.mrb[11].mxu1  ;;  %v445_v13 = vadd.f32 %v439_v9, %v794_v3 }
 0x55a   :  { %v447_v14 = vsel %vm92_vm1, %v445_v13, 0.0  ;;  %v446_v15 = vadd.f32 %v442_v11, %v796_v4 }
 0x55b   :  { %448 = vadd.xlane.f32.xlu1 %v447_v14 }
 0x55c   :  { %v450_v16 = vsel %vm92_vm1, %v446_v15, 0.0 }
 0x55d   :  { %451 = vadd.xlane.f32.xlu0 %v450_v16 }
 0x5e8   :  { %v449_v17 = vpop.xlane.xlu1 %448 }
 0x5e9   :  { %v454_v18 = vmul.f32 0.03125, %v449_v17 }
 0x5ea   :  { %v452_v19 = vpop.xlane.xlu0 %451 }
 0x5eb   :  { %v456_v20 = vsub.f32 %v445_v13, %v454_v18  ;;  %v455_v21 = vmul.f32 0.03125, %v452_v19 }
 0x5ed   :  { %v457_v22 = vsub.f32 %v446_v15, %v455_v21  ;;  %v458_v23 = vmul.f32 %v456_v20, %v456_v20 }
 0x5ef   :  { %v460_v24 = vsel %vm92_vm1, %v458_v23, 0.0  ;;  %v459_v25 = vmul.f32 %v457_v22, %v457_v22 }
 0x5f0   :  { %461 = vadd.xlane.f32.xlu0 %v460_v24 }
 0x5f1   :  { %v463_v3 = vsel %vm92_vm1, %v459_v25, 0.0 }
 0x5f4   :  { %464 = vadd.xlane.f32.xlu0 %v463_v3 }
 0x67d   :  { %v462_v26 = vpop.xlane.xlu0 %461 }
 0x67e   :  { %v466_v4 = vmul.f32 0.03125, %v462_v26 }
 0x680   :  { %v468_v27 = vadd.f32 1e-12, %v466_v4 }
 0x681   :  { %v465_v28 = vpop.xlane.xlu0 %464 }
 0x682   :  { %599 = vrsqrt.f32 %v468_v27  ;;  %v467_v29 = vmul.f32 0.03125, %v465_v28 }
 0x684   :  { %v469_v30 = vadd.f32 1e-12, %v467_v29 }
 0x686   :  { %601 = vrsqrt.f32 %v469_v30 }
 0x68c   :  { %v600_v31 = vpop.eup %599 }
 0x68d   :  { %v472_v33 = vmul.f32 %v600_v31, %v456_v20 }
 0x68f   :  { %v478_v35 = vmul.f32 %v520_v32, %v472_v33 }
 0x690   :  { %v602_v36 = vpop.eup %601 }
 0x691   :  { %v473_v37 = vmul.f32 %v602_v36, %v457_v22  ;;  %v484_v38 = vadd.f32 %v521_v34, %v478_v35 }
 0x693   :  { %v479_v39 = vmul.f32 %v520_v32, %v473_v37  ;;  %486 = vst.msk [vmem:[#allocation8] sm:$0xff] %vm92_vm1, %v484_v38 }
 0x695   :  { %v485_v40 = vadd.f32 %v521_v34, %v479_v39 }
 0x697   :  { %487 = vst.msk [vmem:[#allocation8 + $0x8] sm:$0xff] %vm92_vm1, %v485_v40 }
 0x698   :  { %680 = shalt.err (!%p677_p0)
}
 0x699   :  { %s681_s26 = scalar_lea.hbm %s877_s6, 256 }
 0x69a   :  { %p682_p1 = scmp.ne.s32.totalorder %s877_s6, %s681_s26  ;;  %p685_p2 = scmp.lt.u32.totalorder %s681_s26, %s877_s6 }
 0x69c   :  { %p687_p3 = pnand %p685_p2, %p682_p1 }
 0x69e   :  { %690 = shalt.err (!%p687_p3)
}
 0x69f   :  { %499 = dma.vmem_to_hbm [thread:$0]  %s494_s23, 256, %s877_s6, [#allocation4], %s701_s2, %s701_s2, %s702_s21  }
 0x6a0   :  { %695 = dma.done.wait [#allocation4], 256  }
 0x6a1   :  { %696 = vsyncadd [#allocation4], 4294967040 }
 0x6a2   :  { %503 = vsyncpa [#allocation3], 1 }
 0x6a3   :  { %504 = vsyncpa [#allocation6], 1 }
 0x6a4   :  { %505 = vsyncpa [#allocation4], 1 }

</bundles_post_ra>
